<compile_context>
chip_gen: v5e
topology: v5e:2x2
jax: 0.10.0
libtpu: 0.0.40
codegen_flags: <defaults>
</compile_context>

<pallas_src>
import functools
import math

import jax
import jax.numpy as jnp
import numpy as np
from jax.experimental import pallas as pl
from jax.experimental.pallas import tpu as pltpu

_EPS = 1e-5
_VMEM_TILE_BUDGET = 20 * 1024 * 1024   # per-step footprint target (fits every gen)


# ----------------------------- Pallas kernel -----------------------------

def _fused_tcn_kernel(*refs, K, d, pad, Tt, Bt, H, has_downsample, use_prev):
    """One (batch-block, time-tile) step of the fused TemporalBlock forward.

    refs (in order): [halo?] x w1 shift1 w2 shift2 [wd bd] out
      halo: (Bt, C_in, H)     tail of the previous time tile (causal history)
      x:    (Bt, C_in, Tt)    current time tile (NCL layout), f32
      w1:   (K, C_out, C_in)  conv1 per-tap weights, weight-norm + BN1 scale folded, bf16
      shift1: (C_out, 1)      BN1 shift (+ conv1 bias), f32
      w2:   (K, C_out, C_out) conv2 per-tap weights (folded), bf16
      shift2: (C_out, 1)
      wd, bd: (C_out, C_in), (C_out, 1)  1x1 downsample (only when C_in != C_out)
      out:  (Bt, C_out, Tt)
    """
    idx = 0
    halo_ref = None
    if use_prev:
        halo_ref = refs[idx]; idx += 1
    x_ref = refs[idx]; idx += 1
    w1_ref, s1_ref, w2_ref, s2_ref = refs[idx:idx + 4]; idx += 4
    if has_downsample:
        wd_ref, bd_ref = refs[idx:idx + 2]; idx += 2
    o_ref = refs[idx]

    ti = pl.program_id(1)
    C_in = x_ref.shape[1]
    C_out = o_ref.shape[1]
    L1 = pad + Tt                       # conv1 is evaluated over [start - pad, end)
    bf16 = jnp.bfloat16

    # Hoisted once per grid step (shared by all samples in the batch block).
    s1 = s1_ref[...]
    s2 = s2_ref[...]
    if has_downsample:
        bd = bd_ref[...]
    if pad > 0:
        col = jax.lax.broadcasted_iota(jnp.int32, (1, L1), 1)
        if use_prev:
            keep = jnp.logical_or(ti > 0, col >= pad)   # zero t<0 history on tile 0
        else:
            keep = col >= pad
        zero_hist = jnp.zeros((C_in, 2 * pad), bf16)

    for bi in range(Bt):
        x_f32 = x_ref[bi]                               # (C_in, Tt)
        x16 = x_f32.astype(bf16)

        # --- causal history (2*pad cols) for conv1, built in-register ----------
        if pad > 0:
            if use_prev:
                halo = halo_ref[bi][:, H - 2 * pad:]    # tail of previous tile
                halo = jnp.where(ti == 0, 0.0, halo).astype(bf16)
            else:
                halo = zero_hist
            xp = jnp.concatenate([halo, x16], axis=1)   # (C_in, 2*pad + Tt), bf16
        else:
            xp = x16

        # --- conv1 (+BN1 shift) + ReLU: per-tap accumulating MXU matmuls -------
        acc1 = jnp.zeros((C_out, L1), jnp.float32)
        for k in range(K):
            acc1 += jnp.dot(w1_ref[k], xp[:, k * d: k * d + L1],
                            preferred_element_type=jnp.float32)
        h1 = jnp.maximum(acc1 + s1, 0.0)                # (C_out, pad + Tt)
        if pad > 0:
            h1 = jnp.where(keep, h1, 0.0)               # conv2's causal zero padding
        h1 = h1.astype(bf16)

        # --- conv2 (+BN2 shift) + ReLU (h1 never leaves VMEM) -------------------
        acc2 = jnp.zeros((C_out, Tt), jnp.float32)
        for k in range(K):
            acc2 += jnp.dot(w2_ref[k], h1[:, k * d: k * d + Tt],
                            preferred_element_type=jnp.float32)
        out = jnp.maximum(acc2 + s2, 0.0)               # (C_out, Tt)

        # --- residual (+ optional 1x1 downsample) + final ReLU ------------------
        if has_downsample:
            res = jnp.dot(wd_ref[...], x16, preferred_element_type=jnp.float32) + bd
        else:
            res = x_f32
        o_ref[bi] = jnp.maximum(out + res, 0.0).astype(o_ref.dtype)


# ----------------------------- tiling helpers -----------------------------

def _halo_width(pad, Tt):
    """Smallest 128-multiple covering the 2*pad history that tiles Tt exactly."""
    h = 128 * ((2 * pad + 127) // 128)
    if h == 0:
        return 0
    if Tt % h != 0:
        h = Tt
    return h


def _vmem_footprint(Bt, C_in, C_out, Tt, pad, K, use_prev, has_ds, H):
    """Rough per-step VMEM bytes (pipelined blocks + weights + live temporaries)."""
    f32, bf16 = 4, 2
    ext = Tt + 2 * pad
    b = 2 * Bt * C_in * Tt * f32 + 2 * Bt * C_out * Tt * f32      # x / out (double buf)
    if use_prev:
        b += 2 * Bt * C_in * H * f32                              # halo (double buf)
    b += 2 * K * C_out * (C_in + C_out) * bf16                    # conv weights
    if has_ds:
        b += 2 * (C_out * C_in * bf16 + C_out * f32)
    b += 4 * C_out * f32                                          # shifts
    b += (2 * C_in + 2 * C_out) * ext * bf16                      # bf16 temporaries
    b += (3 * C_out + C_in) * ext * f32                           # f32 accumulators etc.
    return b


def _choose_time_tile(T, pad, fits):
    """Largest lane-legal time tile that covers the causal halo and fits VMEM."""
    if T % 128 != 0:
        return T                      # lane constraint: block must span full T
    cands = [T] if T <= 2048 else []
    cands += [t for t in (2048, 1024, 512, 256, 128)
              if t < T and T % t == 0 and t >= 2 * pad]
    if not cands:
        return T
    for tt in cands:
        if fits(tt):
            return tt
    return cands[-1]


def _choose_batch_tile(B, C_in, C_out, n_t):
    """Pack several samples per grid step when channels are small, but keep
    at least 2 grid steps so both v7x TensorCores get work."""
    if max(C_in, C_out) > 64:
        return 1
    bt = 1
    for cand in (2, 4, 8):
        if B % cand == 0 and (B // cand) * n_t >= 2:
            bt = cand
    return bt


# ----------------------------- glue -----------------------------

def weight_norm_effective(v, g):
    # torch weight_norm default dim=0: per-output-channel norm over (in, k)
    norm = jnp.sqrt(jnp.sum(v * v, axis=(1, 2), keepdims=True))
    return g[:, None, None] * v / norm


def temporal_block_forward(x, params, *, kernel_size, stride, dilation, padding,
                           dropout=0.2, use_se=False, time_tile=None,
                           out_dtype=jnp.float32):
    """x: (B, C_in, T) float32 (PyTorch NCL). Returns (B, C_out, T)."""
    assert stride == 1, "TCN TemporalBlock is used with stride=1"
    assert padding == (kernel_size - 1) * dilation, \
        "residual add requires causal padding = (K-1)*dilation"
    # TODO(synk): SEBlock (use_se=True) path not implemented; default config
    # uses use_se=False.
    assert not use_se

    B, C_in, T = x.shape
    C_out = params["conv1_v"].shape[0]
    K, d, pad = kernel_size, dilation, padding

    # Fold weight_norm and the BatchNorm scale into the conv weights (bf16 for
    # the MXU); only the f32 shift add + ReLU remain in the kernel epilogue.
    scale1 = params["bn1_gamma"] * jax.lax.rsqrt(params["bn1_var"] + _EPS)
    shift1 = params["bn1_beta"] + (params["conv1_b"] - params["bn1_mean"]) * scale1
    w1 = weight_norm_effective(params["conv1_v"], params["conv1_g"]) \
        * scale1[:, None, None]                                   # (C_out, C_in, K)
    w1t = jnp.transpose(w1, (2, 0, 1)).astype(jnp.bfloat16)       # (K, C_out, C_in)

    scale2 = params["bn2_gamma"] * jax.lax.rsqrt(params["bn2_var"] + _EPS)
    shift2 = params["bn2_beta"] + (params["conv2_b"] - params["bn2_mean"]) * scale2
    w2 = weight_norm_effective(params["conv2_v"], params["conv2_g"]) \
        * scale2[:, None, None]                                   # (C_out, C_out, K)
    w2t = jnp.transpose(w2, (2, 0, 1)).astype(jnp.bfloat16)       # (K, C_out, C_out)

    has_ds = C_in != C_out
    if has_ds:
        wd16 = params["ds_w"][:, :, 0].astype(jnp.bfloat16)       # (C_out, C_in)
        bdf = params["ds_b"].astype(jnp.float32)

    # ----- tiling decisions (VMEM-budget aware, generation agnostic) -----
    def fits(tt):
        up = (tt < T) and pad > 0
        h = _halo_width(pad, tt) if up else 0
        return _vmem_footprint(1, C_in, C_out, tt, pad, K, up, has_ds, h) \
            <= _VMEM_TILE_BUDGET

    Tt = time_tile if time_tile is not None else _choose_time_tile(T, pad, fits)
    assert T % Tt == 0, "time tile must divide T"
    assert Tt == T or Tt % 128 == 0, "tiled time blocks must be 128-lane multiples"
    n_t = T // Tt
    assert n_t == 1 or Tt >= 2 * pad, "time tile must cover the causal halo"
    use_prev = (n_t > 1) and (pad > 0)
    H = _halo_width(pad, Tt) if use_prev else 0
    Bt = _choose_batch_tile(B, C_in, C_out, n_t)
    grid = (B // Bt, n_t)

    fp = _vmem_footprint(Bt, C_in, C_out, Tt, pad, K, use_prev, has_ds, H)
    cp_kwargs = dict(dimension_semantics=("parallel", "parallel"))
    if 2 * fp > (12 << 20):
        # raise the scoped-VMEM limit when the footprint is large; stay below
        # v7x's 64 MiB physical VMEM.
        cp_kwargs["vmem_limit_bytes"] = int(min(2 * fp + (4 << 20), 56 << 20))
    compiler_params = pltpu.CompilerParams(**cp_kwargs)

    kern = functools.partial(_fused_tcn_kernel, K=K, d=d, pad=pad, Tt=Tt, Bt=Bt,
                             H=H, has_downsample=has_ds, use_prev=use_prev)

    def _call(single_buffer_weights):
        in_specs, inputs = [], []
        if use_prev:
            tb = Tt // H
            # Narrow halo block: the last H (>= 2*pad) columns of the previous
            # time tile.  Tile 0 re-reads its own head; the kernel masks it.
            in_specs.append(pl.BlockSpec(
                (Bt, C_in, H),
                lambda b, i: (b, 0, jnp.maximum(i * tb - 1, 0))))
            inputs.append(x)
        in_specs.append(pl.BlockSpec((Bt, C_in, Tt), lambda b, i: (b, 0, i)))
        inputs.append(x)

        def wspec(shape):
            nd = len(shape)
            if single_buffer_weights:
                # grid-invariant operands: no need for double-buffered VMEM
                return pl.BlockSpec(shape, lambda b, i: (0,) * nd,
                                    pipeline_mode=pl.Buffered(1))
            return pl.BlockSpec(shape, lambda b, i: (0,) * nd)

        in_specs += [wspec(w1t.shape), wspec((C_out, 1)),
                     wspec(w2t.shape), wspec((C_out, 1))]
        inputs += [w1t, shift1[:, None], w2t, shift2[:, None]]
        if has_ds:
            in_specs += [wspec((C_out, C_in)), wspec((C_out, 1))]
            inputs += [wd16, bdf[:, None]]

        return pl.pallas_call(
            kern,
            out_shape=jax.ShapeDtypeStruct((B, C_out, T), out_dtype),
            grid=grid,
            in_specs=in_specs,
            out_specs=pl.BlockSpec((Bt, C_out, Tt), lambda b, i: (b, 0, i)),
            compiler_params=compiler_params,
        )(*inputs)

    try:
        return _call(True)
    except Exception:
        # pl.Buffered(1) single-buffering unsupported on this JAX version ->
        # fall back to default (double-buffered) weight specs.
        return _call(False)


# ----------------------------- pure-JAX reference -----------------------------

def _ref_forward(x, params, *, dilation, padding):
    def conv(inp, w, b):
        y = jax.lax.conv_general_dilated(
            inp, w, window_strides=(1,), padding=[(padding, padding)],
            rhs_dilation=(dilation,), dimension_numbers=("NCH", "OIH", "NCH"))
        return y + b[None, :, None]

    def bn(y, g, bta, m, v):
        return (y - m[None, :, None]) / jnp.sqrt(v[None, :, None] + _EPS) \
            * g[None, :, None] + bta[None, :, None]

    w1 = weight_norm_effective(params["conv1_v"], params["conv1_g"])
    h = conv(x, w1, params["conv1_b"])[:, :, :-padding]
    h = jax.nn.relu(bn(h, params["bn1_gamma"], params["bn1_beta"],
                       params["bn1_mean"], params["bn1_var"]))
    w2 = weight_norm_effective(params["conv2_v"], params["conv2_g"])
    h2 = conv(h, w2, params["conv2_b"])[:, :, :-padding]
    h2 = jax.nn.relu(bn(h2, params["bn2_gamma"], params["bn2_beta"],
                        params["bn2_mean"], params["bn2_var"]))
    if "ds_w" in params:
        res = jax.lax.conv_general_dilated(
            x, params["ds_w"], window_strides=(1,), padding=[(0, 0)],
            dimension_numbers=("NCH", "OIH", "NCH")) + params["ds_b"][None, :, None]
    else:
        res = x
    return jax.nn.relu(h2 + res)


# ----------------------------- deterministic init -----------------------------

def init_params(key, C_in, C_out, K):
    ks = jax.random.split(key, 14)
    fan1 = C_in * K
    v1 = jax.random.normal(ks[0], (C_out, C_in, K), jnp.float32) * math.sqrt(2.0 / fan1)
    b1 = jax.random.uniform(ks[1], (C_out,), jnp.float32,
                            minval=-1.0 / math.sqrt(fan1), maxval=1.0 / math.sqrt(fan1))
    fan2 = C_out * K
    v2 = jax.random.normal(ks[2], (C_out, C_out, K), jnp.float32) * math.sqrt(2.0 / fan2)
    b2 = jax.random.uniform(ks[3], (C_out,), jnp.float32,
                            minval=-1.0 / math.sqrt(fan2), maxval=1.0 / math.sqrt(fan2))
    params = {
        "conv1_v": v1,
        "conv1_g": jnp.sqrt(jnp.sum(v1 * v1, axis=(1, 2))),
        "conv1_b": b1,
        "conv2_v": v2,
        "conv2_g": jnp.sqrt(jnp.sum(v2 * v2, axis=(1, 2))),
        "conv2_b": b2,
        # non-trivial running stats so the BN folding is actually exercised
        "bn1_gamma": jax.random.uniform(ks[6], (C_out,), jnp.float32, minval=0.8, maxval=1.2),
        "bn1_beta": 0.1 * jax.random.normal(ks[7], (C_out,), jnp.float32),
        "bn1_mean": 0.1 * jax.random.normal(ks[8], (C_out,), jnp.float32),
        "bn1_var": jax.random.uniform(ks[9], (C_out,), jnp.float32, minval=0.5, maxval=1.5),
        "bn2_gamma": jax.random.uniform(ks[10], (C_out,), jnp.float32, minval=0.8, maxval=1.2),
        "bn2_beta": 0.1 * jax.random.normal(ks[11], (C_out,), jnp.float32),
        "bn2_mean": 0.1 * jax.random.normal(ks[12], (C_out,), jnp.float32),
        "bn2_var": jax.random.uniform(ks[13], (C_out,), jnp.float32, minval=0.5, maxval=1.5),
    }
    if C_in != C_out:
        params["ds_w"] = jax.random.normal(ks[4], (C_out, C_in, 1), jnp.float32) \
            * math.sqrt(2.0 / C_in)
        params["ds_b"] = jax.random.uniform(
            ks[5], (C_out,), jnp.float32,
            minval=-1.0 / math.sqrt(C_in), maxval=1.0 / math.sqrt(C_in))
    return params


# ----------------------------- main -----------------------------

if __name__ == "__main__":
    key = jax.random.PRNGKey(0)
    TOL = dict(rtol=5e-2, atol=5e-2)   # bf16 MXU operands (f32 accumulation)

    # Config 1: downsampled residual (C_in != C_out), single time tile.
    B, C_in, C_out, T = 2, 4, 8, 16
    K, stride, dilation = 3, 1, 2
    padding = (K - 1) * dilation
    kx, kp, key = jax.random.split(key, 3)
    x = jax.random.normal(kx, (B, C_in, T), jnp.float32)
    params = init_params(kp, C_in, C_out, K)
    y = jax.block_until_ready(
        temporal_block_forward(x, params, kernel_size=K, stride=stride,
                               dilation=dilation, padding=padding))
    assert y.shape == (B, C_out, T)
    y_ref = jax.block_until_ready(
        _ref_forward(x, params, dilation=dilation, padding=padding))
    np.testing.assert_allclose(np.asarray(y), np.asarray(y_ref), **TOL)

    # Config 2: identity residual, forced time tiling (exercises the 128-lane
    # causal-halo path and batch packing).
    B2, C2, T2, K2, d2 = 2, 8, 256, 3, 4
    pad2 = (K2 - 1) * d2
    kx2, kp2, key = jax.random.split(key, 3)
    x2 = jax.random.normal(kx2, (B2, C2, T2), jnp.float32)
    params2 = init_params(kp2, C2, C2, K2)
    y2 = jax.block_until_ready(
        temporal_block_forward(x2, params2, kernel_size=K2, stride=1,
                               dilation=d2, padding=pad2, time_tile=128))
    assert y2.shape == (B2, C2, T2)
    y2_ref = jax.block_until_ready(
        _ref_forward(x2, params2, dilation=d2, padding=pad2))
    np.testing.assert_allclose(np.asarray(y2), np.asarray(y2_ref), **TOL)

    print("KERNEL_OK")
</pallas_src>

<mosaic_0001>
module attributes {stable_mosaic.version = 11 : i64} {
  func.func @_fused_tcn_kernel(%arg0: i32, %arg1: i32, %arg2: memref<1x4x16xf32, #tpu.memory_space<vmem>>, %arg3: memref<3x8x4xbf16, #tpu.memory_space<vmem>>, %arg4: memref<8x1xf32, #tpu.memory_space<vmem>>, %arg5: memref<3x8x8xbf16, #tpu.memory_space<vmem>>, %arg6: memref<8x1xf32, #tpu.memory_space<vmem>>, %arg7: memref<8x4xbf16, #tpu.memory_space<vmem>>, %arg8: memref<8x1xf32, #tpu.memory_space<vmem>>, %arg9: memref<1x8x16xf32, #tpu.memory_space<vmem>>) attributes {dimension_semantics = [#tpu.dimension_semantics<parallel>, #tpu.dimension_semantics<parallel>], iteration_bounds = array<i64: 2, 1>, scalar_prefetch = 0 : i64, scratch_operands = 0 : i64, tpu.core_type = #tpu.core_type<tc>, window_params = [{transform_indices = @transform_0, window_bounds = array<i64: 1, 4, 16>}, {pipeline_mode = #tpu.pipeline_mode<synchronous>, transform_indices = @transform_1, window_bounds = array<i64: 3, 8, 4>}, {pipeline_mode = #tpu.pipeline_mode<synchronous>, transform_indices = @transform_2, window_bounds = array<i64: 8, 1>}, {pipeline_mode = #tpu.pipeline_mode<synchronous>, transform_indices = @transform_3, window_bounds = array<i64: 3, 8, 8>}, {pipeline_mode = #tpu.pipeline_mode<synchronous>, transform_indices = @transform_4, window_bounds = array<i64: 8, 1>}, {pipeline_mode = #tpu.pipeline_mode<synchronous>, transform_indices = @transform_5, window_bounds = array<i64: 8, 4>}, {pipeline_mode = #tpu.pipeline_mode<synchronous>, transform_indices = @transform_6, window_bounds = array<i64: 8, 1>}, {transform_indices = @transform_7, window_bounds = array<i64: 1, 8, 16>}]} {
    %c0 = arith.constant 0 : index
    %c0_0 = arith.constant 0 : index
    %0 = vector.load %arg4[%c0, %c0_0] : memref<8x1xf32, #tpu.memory_space<vmem>>, vector<8x1xf32>
    %c0_1 = arith.constant 0 : index
    %c0_2 = arith.constant 0 : index
    %1 = vector.load %arg6[%c0_1, %c0_2] : memref<8x1xf32, #tpu.memory_space<vmem>>, vector<8x1xf32>
    %c0_3 = arith.constant 0 : index
    %c0_4 = arith.constant 0 : index
    %2 = vector.load %arg8[%c0_3, %c0_4] : memref<8x1xf32, #tpu.memory_space<vmem>>, vector<8x1xf32>
    %3 = tpu.iota {dimensions = array<i32: 1>} : vector<1x20xi32>
    %c4_i32 = arith.constant 4 : i32
    %4 = vector.broadcast %c4_i32 : i32 to vector<1x20xi32>
    %5 = arith.cmpi sge, %3, %4 : vector<1x20xi32>
    %cst = arith.constant 0.000000e+00 : bf16
    %6 = vector.broadcast %cst : bf16 to vector<4x8xbf16>
    %c0_5 = arith.constant 0 : index
    %c0_6 = arith.constant 0 : index
    %c0_7 = arith.constant 0 : index
    %7 = vector.load %arg2[%c0_5, %c0_6, %c0_7] : memref<1x4x16xf32, #tpu.memory_space<vmem>>, vector<1x4x16xf32>
    %8 = vector.shape_cast %7 : vector<1x4x16xf32> to vector<4x16xf32>
    %9 = arith.truncf %8 : vector<4x16xf32> to vector<4x16xbf16>
    %10 = tpu.concatenate %6, %9 in 1 : vector<4x8xbf16>, vector<4x16xbf16> -> vector<4x24xbf16>
    %cst_8 = arith.constant 0.000000e+00 : f32
    %11 = vector.broadcast %cst_8 : f32 to vector<8x20xf32>
    %c0_9 = arith.constant 0 : index
    %c0_10 = arith.constant 0 : index
    %c0_11 = arith.constant 0 : index
    %12 = vector.load %arg3[%c0_9, %c0_10, %c0_11] : memref<3x8x4xbf16, #tpu.memory_space<vmem>>, vector<1x8x4xbf16>
    %13 = vector.shape_cast %12 : vector<1x8x4xbf16> to vector<8x4xbf16>
    %14 = vector.extract_strided_slice %10 {offsets = [0, 0], sizes = [4, 20], strides = [1, 1]} : vector<4x24xbf16> to vector<4x20xbf16>
    %cst_12 = arith.constant dense<0.000000e+00> : vector<8x20xf32>
    %15 = tpu.matmul %13, %14, %cst_12 {dimension_numbers = #tpu.dot_dimension_numbers<[1], [0], [0], [1], [0, 0, 1, 1], [], []>} : vector<8x4xbf16>, vector<4x20xbf16>, vector<8x20xf32> -> vector<8x20xf32>
    %16 = arith.addf %11, %15 : vector<8x20xf32>
    %c1 = arith.constant 1 : index
    %c0_13 = arith.constant 0 : index
    %c0_14 = arith.constant 0 : index
    %17 = vector.load %arg3[%c1, %c0_13, %c0_14] : memref<3x8x4xbf16, #tpu.memory_space<vmem>>, vector<1x8x4xbf16>
    %18 = vector.shape_cast %17 : vector<1x8x4xbf16> to vector<8x4xbf16>
    %19 = vector.extract_strided_slice %10 {offsets = [0, 2], sizes = [4, 20], strides = [1, 1]} : vector<4x24xbf16> to vector<4x20xbf16>
    %cst_15 = arith.constant dense<0.000000e+00> : vector<8x20xf32>
    %20 = tpu.matmul %18, %19, %cst_15 {dimension_numbers = #tpu.dot_dimension_numbers<[1], [0], [0], [1], [0, 0, 1, 1], [], []>} : vector<8x4xbf16>, vector<4x20xbf16>, vector<8x20xf32> -> vector<8x20xf32>
    %21 = arith.addf %16, %20 : vector<8x20xf32>
    %c2 = arith.constant 2 : index
    %c0_16 = arith.constant 0 : index
    %c0_17 = arith.constant 0 : index
    %22 = vector.load %arg3[%c2, %c0_16, %c0_17] : memref<3x8x4xbf16, #tpu.memory_space<vmem>>, vector<1x8x4xbf16>
    %23 = vector.shape_cast %22 : vector<1x8x4xbf16> to vector<8x4xbf16>
    %24 = vector.extract_strided_slice %10 {offsets = [0, 4], sizes = [4, 20], strides = [1, 1]} : vector<4x24xbf16> to vector<4x20xbf16>
    %cst_18 = arith.constant dense<0.000000e+00> : vector<8x20xf32>
    %25 = tpu.matmul %23, %24, %cst_18 {dimension_numbers = #tpu.dot_dimension_numbers<[1], [0], [0], [1], [0, 0, 1, 1], [], []>} : vector<8x4xbf16>, vector<4x20xbf16>, vector<8x20xf32> -> vector<8x20xf32>
    %26 = arith.addf %21, %25 : vector<8x20xf32>
    %27 = vector.broadcast %0 : vector<8x1xf32> to vector<8x20xf32>
    %28 = arith.addf %26, %27 : vector<8x20xf32>
    %cst_19 = arith.constant 0.000000e+00 : f32
    %29 = vector.broadcast %cst_19 : f32 to vector<8x20xf32>
    %30 = arith.maximumf %28, %29 : vector<8x20xf32>
    %cst_20 = arith.constant 0.000000e+00 : f32
    %31 = vector.shape_cast %5 : vector<1x20xi1> to vector<1x20xi1>
    %32 = vector.broadcast %31 : vector<1x20xi1> to vector<8x20xi1>
    %33 = vector.broadcast %cst_20 : f32 to vector<8x20xf32>
    %34 = arith.select %32, %30, %33 : vector<8x20xi1>, vector<8x20xf32>
    %35 = arith.truncf %34 : vector<8x20xf32> to vector<8x20xbf16>
    %cst_21 = arith.constant 0.000000e+00 : f32
    %36 = vector.broadcast %cst_21 : f32 to vector<8x16xf32>
    %c0_22 = arith.constant 0 : index
    %c0_23 = arith.constant 0 : index
    %c0_24 = arith.constant 0 : index
    %37 = vector.load %arg5[%c0_22, %c0_23, %c0_24] : memref<3x8x8xbf16, #tpu.memory_space<vmem>>, vector<1x8x8xbf16>
    %38 = vector.shape_cast %37 : vector<1x8x8xbf16> to vector<8x8xbf16>
    %39 = vector.extract_strided_slice %35 {offsets = [0, 0], sizes = [8, 16], strides = [1, 1]} : vector<8x20xbf16> to vector<8x16xbf16>
    %cst_25 = arith.constant dense<0.000000e+00> : vector<8x16xf32>
    %40 = tpu.matmul %38, %39, %cst_25 {dimension_numbers = #tpu.dot_dimension_numbers<[1], [0], [0], [1], [0, 0, 1, 1], [], []>} : vector<8x8xbf16>, vector<8x16xbf16>, vector<8x16xf32> -> vector<8x16xf32>
    %41 = arith.addf %36, %40 : vector<8x16xf32>
    %c1_26 = arith.constant 1 : index
    %c0_27 = arith.constant 0 : index
    %c0_28 = arith.constant 0 : index
    %42 = vector.load %arg5[%c1_26, %c0_27, %c0_28] : memref<3x8x8xbf16, #tpu.memory_space<vmem>>, vector<1x8x8xbf16>
    %43 = vector.shape_cast %42 : vector<1x8x8xbf16> to vector<8x8xbf16>
    %44 = vector.extract_strided_slice %35 {offsets = [0, 2], sizes = [8, 16], strides = [1, 1]} : vector<8x20xbf16> to vector<8x16xbf16>
    %cst_29 = arith.constant dense<0.000000e+00> : vector<8x16xf32>
    %45 = tpu.matmul %43, %44, %cst_29 {dimension_numbers = #tpu.dot_dimension_numbers<[1], [0], [0], [1], [0, 0, 1, 1], [], []>} : vector<8x8xbf16>, vector<8x16xbf16>, vector<8x16xf32> -> vector<8x16xf32>
    %46 = arith.addf %41, %45 : vector<8x16xf32>
    %c2_30 = arith.constant 2 : index
    %c0_31 = arith.constant 0 : index
    %c0_32 = arith.constant 0 : index
    %47 = vector.load %arg5[%c2_30, %c0_31, %c0_32] : memref<3x8x8xbf16, #tpu.memory_space<vmem>>, vector<1x8x8xbf16>
    %48 = vector.shape_cast %47 : vector<1x8x8xbf16> to vector<8x8xbf16>
    %49 = vector.extract_strided_slice %35 {offsets = [0, 4], sizes = [8, 16], strides = [1, 1]} : vector<8x20xbf16> to vector<8x16xbf16>
    %cst_33 = arith.constant dense<0.000000e+00> : vector<8x16xf32>
    %50 = tpu.matmul %48, %49, %cst_33 {dimension_numbers = #tpu.dot_dimension_numbers<[1], [0], [0], [1], [0, 0, 1, 1], [], []>} : vector<8x8xbf16>, vector<8x16xbf16>, vector<8x16xf32> -> vector<8x16xf32>
    %51 = arith.addf %46, %50 : vector<8x16xf32>
    %52 = vector.broadcast %1 : vector<8x1xf32> to vector<8x16xf32>
    %53 = arith.addf %51, %52 : vector<8x16xf32>
    %cst_34 = arith.constant 0.000000e+00 : f32
    %54 = vector.broadcast %cst_34 : f32 to vector<8x16xf32>
    %55 = arith.maximumf %53, %54 : vector<8x16xf32>
    %c0_35 = arith.constant 0 : index
    %c0_36 = arith.constant 0 : index
    %56 = vector.load %arg7[%c0_35, %c0_36] : memref<8x4xbf16, #tpu.memory_space<vmem>>, vector<8x4xbf16>
    %cst_37 = arith.constant dense<0.000000e+00> : vector<8x16xf32>
    %57 = tpu.matmul %56, %9, %cst_37 {dimension_numbers = #tpu.dot_dimension_numbers<[1], [0], [0], [1], [0, 0, 1, 1], [], []>} : vector<8x4xbf16>, vector<4x16xbf16>, vector<8x16xf32> -> vector<8x16xf32>
    %58 = vector.broadcast %2 : vector<8x1xf32> to vector<8x16xf32>
    %59 = arith.addf %57, %58 : vector<8x16xf32>
    %60 = arith.addf %55, %59 : vector<8x16xf32>
    %cst_38 = arith.constant 0.000000e+00 : f32
    %61 = vector.broadcast %cst_38 : f32 to vector<8x16xf32>
    %62 = arith.maximumf %60, %61 : vector<8x16xf32>
    %c0_39 = arith.constant 0 : index
    %c0_40 = arith.constant 0 : index
    %c0_41 = arith.constant 0 : index
    %63 = vector.load %arg9[%c0_39, %c0_40, %c0_41] : memref<1x8x16xf32, #tpu.memory_space<vmem>>, vector<1x8x16xf32>
    %64 = vector.shape_cast %63 : vector<1x8x16xf32> to vector<8x16xf32>
    %65 = vector.shape_cast %62 : vector<8x16xf32> to vector<1x8x16xf32>
    tpu.vector_store %arg9[%c0_39, %c0_40, %c0_41], %65 {strides = array<i32>} : memref<1x8x16xf32, #tpu.memory_space<vmem>>, vector<1x8x16xf32>,
    return
  }
  func.func @transform_0(%arg0: i32, %arg1: i32) -> (i32, i32, i32) {
    %c0_i32 = arith.constant 0 : i32
    %c0_i32_0 = arith.constant 0 : i32
    return %arg0, %c0_i32, %arg1 : i32, i32, i32
  }
  func.func @transform_1(%arg0: i32, %arg1: i32) -> (i32, i32, i32) {
    %c0_i32 = arith.constant 0 : i32
    %c0_i32_0 = arith.constant 0 : i32
    %c0_i32_1 = arith.constant 0 : i32
    %c0_i32_2 = arith.constant 0 : i32
    return %c0_i32, %c0_i32_0, %c0_i32_1 : i32, i32, i32
  }
  func.func @transform_2(%arg0: i32, %arg1: i32) -> (i32, i32) {
    %c0_i32 = arith.constant 0 : i32
    %c0_i32_0 = arith.constant 0 : i32
    %c0_i32_1 = arith.constant 0 : i32
    return %c0_i32, %c0_i32_0 : i32, i32
  }
  func.func @transform_3(%arg0: i32, %arg1: i32) -> (i32, i32, i32) {
    %c0_i32 = arith.constant 0 : i32
    %c0_i32_0 = arith.constant 0 : i32
    %c0_i32_1 = arith.constant 0 : i32
    %c0_i32_2 = arith.constant 0 : i32
    return %c0_i32, %c0_i32_0, %c0_i32_1 : i32, i32, i32
  }
  func.func @transform_4(%arg0: i32, %arg1: i32) -> (i32, i32) {
    %c0_i32 = arith.constant 0 : i32
    %c0_i32_0 = arith.constant 0 : i32
    %c0_i32_1 = arith.constant 0 : i32
    return %c0_i32, %c0_i32_0 : i32, i32
  }
  func.func @transform_5(%arg0: i32, %arg1: i32) -> (i32, i32) {
    %c0_i32 = arith.constant 0 : i32
    %c0_i32_0 = arith.constant 0 : i32
    %c0_i32_1 = arith.constant 0 : i32
    return %c0_i32, %c0_i32_0 : i32, i32
  }
  func.func @transform_6(%arg0: i32, %arg1: i32) -> (i32, i32) {
    %c0_i32 = arith.constant 0 : i32
    %c0_i32_0 = arith.constant 0 : i32
    %c0_i32_1 = arith.constant 0 : i32
    return %c0_i32, %c0_i32_0 : i32, i32
  }
  func.func @transform_7(%arg0: i32, %arg1: i32) -> (i32, i32, i32) {
    %c0_i32 = arith.constant 0 : i32
    %c0_i32_0 = arith.constant 0 : i32
    return %arg0, %c0_i32, %arg1 : i32, i32, i32
  }
}

module attributes {stable_mosaic.version = 11 : i64} {
  func.func @_fused_tcn_kernel(%arg0: i32, %arg1: i32, %arg2: memref<1x4x16xf32, #tpu.memory_space<vmem>>, %arg3: memref<3x8x4xbf16, #tpu.memory_space<vmem>>, %arg4: memref<8x1xf32, #tpu.memory_space<vmem>>, %arg5: memref<3x8x8xbf16, #tpu.memory_space<vmem>>, %arg6: memref<8x1xf32, #tpu.memory_space<vmem>>, %arg7: memref<8x4xbf16, #tpu.memory_space<vmem>>, %arg8: memref<8x1xf32, #tpu.memory_space<vmem>>, %arg9: memref<1x8x16xf32, #tpu.memory_space<vmem>>) attributes {dimension_semantics = [#tpu.dimension_semantics<parallel>, #tpu.dimension_semantics<parallel>], iteration_bounds = array<i64: 2, 1>, scalar_prefetch = 0 : i64, scratch_operands = 0 : i64, tpu.core_type = #tpu.core_type<tc>, window_params = [{transform_indices = @transform_0, window_bounds = array<i64: 1, 4, 16>}, {pipeline_mode = #tpu.pipeline_mode<synchronous>, transform_indices = @transform_1, window_bounds = array<i64: 3, 8, 4>}, {pipeline_mode = #tpu.pipeline_mode<synchronous>, transform_indices = @transform_2, window_bounds = array<i64: 8, 1>}, {pipeline_mode = #tpu.pipeline_mode<synchronous>, transform_indices = @transform_3, window_bounds = array<i64: 3, 8, 8>}, {pipeline_mode = #tpu.pipeline_mode<synchronous>, transform_indices = @transform_4, window_bounds = array<i64: 8, 1>}, {pipeline_mode = #tpu.pipeline_mode<synchronous>, transform_indices = @transform_5, window_bounds = array<i64: 8, 4>}, {pipeline_mode = #tpu.pipeline_mode<synchronous>, transform_indices = @transform_6, window_bounds = array<i64: 8, 1>}, {transform_indices = @transform_7, window_bounds = array<i64: 1, 8, 16>}]} {
    %c0 = arith.constant 0 : index
    %c0_0 = arith.constant 0 : index
    %0 = vector.load %arg4[%c0, %c0_0] : memref<8x1xf32, #tpu.memory_space<vmem>>, vector<8x1xf32>
    %c0_1 = arith.constant 0 : index
    %c0_2 = arith.constant 0 : index
    %1 = vector.load %arg6[%c0_1, %c0_2] : memref<8x1xf32, #tpu.memory_space<vmem>>, vector<8x1xf32>
    %c0_3 = arith.constant 0 : index
    %c0_4 = arith.constant 0 : index
    %2 = vector.load %arg8[%c0_3, %c0_4] : memref<8x1xf32, #tpu.memory_space<vmem>>, vector<8x1xf32>
    %3 = tpu.iota {dimensions = array<i32: 1>} : vector<1x20xi32>
    %c4_i32 = arith.constant 4 : i32
    %4 = vector.broadcast %c4_i32 : i32 to vector<1x20xi32>
    %5 = arith.cmpi sge, %3, %4 : vector<1x20xi32>
    %cst = arith.constant 0.000000e+00 : bf16
    %6 = vector.broadcast %cst : bf16 to vector<4x8xbf16>
    %c0_5 = arith.constant 0 : index
    %c0_6 = arith.constant 0 : index
    %c0_7 = arith.constant 0 : index
    %7 = vector.load %arg2[%c0_5, %c0_6, %c0_7] : memref<1x4x16xf32, #tpu.memory_space<vmem>>, vector<1x4x16xf32>
    %8 = vector.shape_cast %7 : vector<1x4x16xf32> to vector<4x16xf32>
    %9 = arith.truncf %8 : vector<4x16xf32> to vector<4x16xbf16>
    %10 = tpu.concatenate %6, %9 in 1 : vector<4x8xbf16>, vector<4x16xbf16> -> vector<4x24xbf16>
    %cst_8 = arith.constant 0.000000e+00 : f32
    %11 = vector.broadcast %cst_8 : f32 to vector<8x20xf32>
    %c0_9 = arith.constant 0 : index
    %c0_10 = arith.constant 0 : index
    %c0_11 = arith.constant 0 : index
    %12 = vector.load %arg3[%c0_9, %c0_10, %c0_11] : memref<3x8x4xbf16, #tpu.memory_space<vmem>>, vector<1x8x4xbf16>
    %13 = vector.shape_cast %12 : vector<1x8x4xbf16> to vector<8x4xbf16>
    %14 = vector.extract_strided_slice %10 {offsets = [0, 0], sizes = [4, 20], strides = [1, 1]} : vector<4x24xbf16> to vector<4x20xbf16>
    %cst_12 = arith.constant dense<0.000000e+00> : vector<8x20xf32>
    %15 = tpu.matmul %13, %14, %cst_12 {dimension_numbers = #tpu.dot_dimension_numbers<[1], [0], [0], [1], [0, 0, 1, 1], [], []>} : vector<8x4xbf16>, vector<4x20xbf16>, vector<8x20xf32> -> vector<8x20xf32>
    %16 = arith.addf %11, %15 : vector<8x20xf32>
    %c1 = arith.constant 1 : index
    %c0_13 = arith.constant 0 : index
    %c0_14 = arith.constant 0 : index
    %17 = vector.load %arg3[%c1, %c0_13, %c0_14] : memref<3x8x4xbf16, #tpu.memory_space<vmem>>, vector<1x8x4xbf16>
    %18 = vector.shape_cast %17 : vector<1x8x4xbf16> to vector<8x4xbf16>
    %19 = vector.extract_strided_slice %10 {offsets = [0, 2], sizes = [4, 20], strides = [1, 1]} : vector<4x24xbf16> to vector<4x20xbf16>
    %cst_15 = arith.constant dense<0.000000e+00> : vector<8x20xf32>
    %20 = tpu.matmul %18, %19, %cst_15 {dimension_numbers = #tpu.dot_dimension_numbers<[1], [0], [0], [1], [0, 0, 1, 1], [], []>} : vector<8x4xbf16>, vector<4x20xbf16>, vector<8x20xf32> -> vector<8x20xf32>
    %21 = arith.addf %16, %20 : vector<8x20xf32>
    %c2 = arith.constant 2 : index
    %c0_16 = arith.constant 0 : index
    %c0_17 = arith.constant 0 : index
    %22 = vector.load %arg3[%c2, %c0_16, %c0_17] : memref<3x8x4xbf16, #tpu.memory_space<vmem>>, vector<1x8x4xbf16>
    %23 = vector.shape_cast %22 : vector<1x8x4xbf16> to vector<8x4xbf16>
    %24 = vector.extract_strided_slice %10 {offsets = [0, 4], sizes = [4, 20], strides = [1, 1]} : vector<4x24xbf16> to vector<4x20xbf16>
    %cst_18 = arith.constant dense<0.000000e+00> : vector<8x20xf32>
    %25 = tpu.matmul %23, %24, %cst_18 {dimension_numbers = #tpu.dot_dimension_numbers<[1], [0], [0], [1], [0, 0, 1, 1], [], []>} : vector<8x4xbf16>, vector<4x20xbf16>, vector<8x20xf32> -> vector<8x20xf32>
    %26 = arith.addf %21, %25 : vector<8x20xf32>
    %27 = vector.broadcast %0 : vector<8x1xf32> to vector<8x20xf32>
    %28 = arith.addf %26, %27 : vector<8x20xf32>
    %cst_19 = arith.constant 0.000000e+00 : f32
    %29 = vector.broadcast %cst_19 : f32 to vector<8x20xf32>
    %30 = arith.maximumf %28, %29 : vector<8x20xf32>
    %cst_20 = arith.constant 0.000000e+00 : f32
    %31 = vector.shape_cast %5 : vector<1x20xi1> to vector<1x20xi1>
    %32 = vector.broadcast %31 : vector<1x20xi1> to vector<8x20xi1>
    %33 = vector.broadcast %cst_20 : f32 to vector<8x20xf32>
    %34 = arith.select %32, %30, %33 : vector<8x20xi1>, vector<8x20xf32>
    %35 = arith.truncf %34 : vector<8x20xf32> to vector<8x20xbf16>
    %cst_21 = arith.constant 0.000000e+00 : f32
    %36 = vector.broadcast %cst_21 : f32 to vector<8x16xf32>
    %c0_22 = arith.constant 0 : index
    %c0_23 = arith.constant 0 : index
    %c0_24 = arith.constant 0 : index
    %37 = vector.load %arg5[%c0_22, %c0_23, %c0_24] : memref<3x8x8xbf16, #tpu.memory_space<vmem>>, vector<1x8x8xbf16>
    %38 = vector.shape_cast %37 : vector<1x8x8xbf16> to vector<8x8xbf16>
    %39 = vector.extract_strided_slice %35 {offsets = [0, 0], sizes = [8, 16], strides = [1, 1]} : vector<8x20xbf16> to vector<8x16xbf16>
    %cst_25 = arith.constant dense<0.000000e+00> : vector<8x16xf32>
    %40 = tpu.matmul %38, %39, %cst_25 {dimension_numbers = #tpu.dot_dimension_numbers<[1], [0], [0], [1], [0, 0, 1, 1], [], []>} : vector<8x8xbf16>, vector<8x16xbf16>, vector<8x16xf32> -> vector<8x16xf32>
    %41 = arith.addf %36, %40 : vector<8x16xf32>
    %c1_26 = arith.constant 1 : index
    %c0_27 = arith.constant 0 : index
    %c0_28 = arith.constant 0 : index
    %42 = vector.load %arg5[%c1_26, %c0_27, %c0_28] : memref<3x8x8xbf16, #tpu.memory_space<vmem>>, vector<1x8x8xbf16>
    %43 = vector.shape_cast %42 : vector<1x8x8xbf16> to vector<8x8xbf16>
    %44 = vector.extract_strided_slice %35 {offsets = [0, 2], sizes = [8, 16], strides = [1, 1]} : vector<8x20xbf16> to vector<8x16xbf16>
    %cst_29 = arith.constant dense<0.000000e+00> : vector<8x16xf32>
    %45 = tpu.matmul %43, %44, %cst_29 {dimension_numbers = #tpu.dot_dimension_numbers<[1], [0], [0], [1], [0, 0, 1, 1], [], []>} : vector<8x8xbf16>, vector<8x16xbf16>, vector<8x16xf32> -> vector<8x16xf32>
    %46 = arith.addf %41, %45 : vector<8x16xf32>
    %c2_30 = arith.constant 2 : index
    %c0_31 = arith.constant 0 : index
    %c0_32 = arith.constant 0 : index
    %47 = vector.load %arg5[%c2_30, %c0_31, %c0_32] : memref<3x8x8xbf16, #tpu.memory_space<vmem>>, vector<1x8x8xbf16>
    %48 = vector.shape_cast %47 : vector<1x8x8xbf16> to vector<8x8xbf16>
    %49 = vector.extract_strided_slice %35 {offsets = [0, 4], sizes = [8, 16], strides = [1, 1]} : vector<8x20xbf16> to vector<8x16xbf16>
    %cst_33 = arith.constant dense<0.000000e+00> : vector<8x16xf32>
    %50 = tpu.matmul %48, %49, %cst_33 {dimension_numbers = #tpu.dot_dimension_numbers<[1], [0], [0], [1], [0, 0, 1, 1], [], []>} : vector<8x8xbf16>, vector<8x16xbf16>, vector<8x16xf32> -> vector<8x16xf32>
    %51 = arith.addf %46, %50 : vector<8x16xf32>
    %52 = vector.broadcast %1 : vector<8x1xf32> to vector<8x16xf32>
    %53 = arith.addf %51, %52 : vector<8x16xf32>
    %cst_34 = arith.constant 0.000000e+00 : f32
    %54 = vector.broadcast %cst_34 : f32 to vector<8x16xf32>
    %55 = arith.maximumf %53, %54 : vector<8x16xf32>
    %c0_35 = arith.constant 0 : index
    %c0_36 = arith.constant 0 : index
    %56 = vector.load %arg7[%c0_35, %c0_36] : memref<8x4xbf16, #tpu.memory_space<vmem>>, vector<8x4xbf16>
    %cst_37 = arith.constant dense<0.000000e+00> : vector<8x16xf32>
    %57 = tpu.matmul %56, %9, %cst_37 {dimension_numbers = #tpu.dot_dimension_numbers<[1], [0], [0], [1], [0, 0, 1, 1], [], []>} : vector<8x4xbf16>, vector<4x16xbf16>, vector<8x16xf32> -> vector<8x16xf32>
    %58 = vector.broadcast %2 : vector<8x1xf32> to vector<8x16xf32>
    %59 = arith.addf %57, %58 : vector<8x16xf32>
    %60 = arith.addf %55, %59 : vector<8x16xf32>
    %cst_38 = arith.constant 0.000000e+00 : f32
    %61 = vector.broadcast %cst_38 : f32 to vector<8x16xf32>
    %62 = arith.maximumf %60, %61 : vector<8x16xf32>
    %c0_39 = arith.constant 0 : index
    %c0_40 = arith.constant 0 : index
    %c0_41 = arith.constant 0 : index
    %63 = vector.load %arg9[%c0_39, %c0_40, %c0_41] : memref<1x8x16xf32, #tpu.memory_space<vmem>>, vector<1x8x16xf32>
    %64 = vector.shape_cast %63 : vector<1x8x16xf32> to vector<8x16xf32>
    %65 = vector.shape_cast %62 : vector<8x16xf32> to vector<1x8x16xf32>
    tpu.vector_store %arg9[%c0_39, %c0_40, %c0_41], %65 {strides = array<i32>} : memref<1x8x16xf32, #tpu.memory_space<vmem>>, vector<1x8x16xf32>,
    return
  }
  func.func @transform_0(%arg0: i32, %arg1: i32) -> (i32, i32, i32) {
    %c0_i32 = arith.constant 0 : i32
    %c0_i32_0 = arith.constant 0 : i32
    return %arg0, %c0_i32, %arg1 : i32, i32, i32
  }
  func.func @transform_1(%arg0: i32, %arg1: i32) -> (i32, i32, i32) {
    %c0_i32 = arith.constant 0 : i32
    %c0_i32_0 = arith.constant 0 : i32
    %c0_i32_1 = arith.constant 0 : i32
    %c0_i32_2 = arith.constant 0 : i32
    return %c0_i32, %c0_i32_0, %c0_i32_1 : i32, i32, i32
  }
  func.func @transform_2(%arg0: i32, %arg1: i32) -> (i32, i32) {
    %c0_i32 = arith.constant 0 : i32
    %c0_i32_0 = arith.constant 0 : i32
    %c0_i32_1 = arith.constant 0 : i32
    return %c0_i32, %c0_i32_0 : i32, i32
  }
  func.func @transform_3(%arg0: i32, %arg1: i32) -> (i32, i32, i32) {
    %c0_i32 = arith.constant 0 : i32
    %c0_i32_0 = arith.constant 0 : i32
    %c0_i32_1 = arith.constant 0 : i32
    %c0_i32_2 = arith.constant 0 : i32
    return %c0_i32, %c0_i32_0, %c0_i32_1 : i32, i32, i32
  }
  func.func @transform_4(%arg0: i32, %arg1: i32) -> (i32, i32) {
    %c0_i32 = arith.constant 0 : i32
    %c0_i32_0 = arith.constant 0 : i32
    %c0_i32_1 = arith.constant 0 : i32
    return %c0_i32, %c0_i32_0 : i32, i32
  }
  func.func @transform_5(%arg0: i32, %arg1: i32) -> (i32, i32) {
    %c0_i32 = arith.constant 0 : i32
    %c0_i32_0 = arith.constant 0 : i32
    %c0_i32_1 = arith.constant 0 : i32
    return %c0_i32, %c0_i32_0 : i32, i32
  }
  func.func @transform_6(%arg0: i32, %arg1: i32) -> (i32, i32) {
    %c0_i32 = arith.constant 0 : i32
    %c0_i32_0 = arith.constant 0 : i32
    %c0_i32_1 = arith.constant 0 : i32
    return %c0_i32, %c0_i32_0 : i32, i32
  }
  func.func @transform_7(%arg0: i32, %arg1: i32) -> (i32, i32, i32) {
    %c0_i32 = arith.constant 0 : i32
    %c0_i32_0 = arith.constant 0 : i32
    return %arg0, %c0_i32, %arg1 : i32, i32, i32
  }
}

</mosaic_0001>

<bundles_post_ra>
// kernel: tpu_custom_call.1
= control target key start
LH: loop header
LB: loop body
LE: loop exit
PB: predicated region body
PF: predicated region fallthrough
CT: control target
= control target key end

     0   :  { %12 = vsyncpa [#allocation3], 0  ;;  %s945_s0 = inlined_call_operand.vmem [shape: f32[2,4,16], index: 0, kind: input, shape index: {}]   ;;  %s946_s1 = inlined_call_operand.vmem [shape: bf16[3,8,4], index: 1, kind: input, shape index: {}]   ;;  %s947_s2 = inlined_call_operand.vmem [shape: f32[8,1], index: 2, kind: input, shape index: {}]   ;;  %s948_s3 = inlined_call_operand.vmem [shape: bf16[3,8,8], index: 3, kind: input, shape index: {}]   ;;  %s949_s4 = inlined_call_operand.vmem [shape: f32[8,1], index: 4, kind: input, shape index: {}]   ;;  %s950_s5 = inlined_call_operand.vmem [shape: bf16[8,4], index: 5, kind: input, shape index: {}]   ;;  %s951_s6 = inlined_call_operand.vmem [shape: f32[8,1], index: 6, kind: input, shape index: {}]   ;;  %s952_s7 = inlined_call_operand.hbm [shape: f32[2,8,16], index: 7, kind: output, shape index: {}]  }
   0x1   :  { %14 = vsyncpa [#allocation3 + $0x1], 0  ;;  %s799_s24 = smov 0   ;;  %s801_s25 = smov 0  }
   0x2   :  { %s803_s26 = smov 0   ;;  %s805_s27 = smov 0  }
   0x3   :  { %s807_s28 = smov 0   ;;  %s809_s29 = smov 0  }
   0x4 LB: > { %s592_s30 = sadd.s32 4294967295, %s753_s29   ;;  %s593_s8 = sadd.s32 4294967294, %s753_s29   ;;  %s753_s29 = sphi %s809_s29, %s20_s29   ;;  %s749_s28 = sphi %s807_s28, %s959_s28   ;;  %s745_s27 = sphi %s805_s27, %s958_s27   ;;  %s741_s26 = sphi %s803_s26, %s957_s26   ;;  %s737_s25 = sphi %s801_s25, %s956_s25   ;;  %s733_s24 = sphi %s799_s24, %s955_s24  }
   0x5   : > { %s32_s9 = sadd.s32 1, %s749_s28  ;;  %s195_s10 = sadd.s32 1, %s741_s26 }
   0x6   : > { %p34_p0 = scmp.ge.s32.totalorder %s32_s9, 2  ;;  %p205_p1 = scmp.ne.s32.totalorder %s741_s26, %s737_s25 }
   0x7   : > { %p206_p2 = scmp.eq.s32.totalorder %s592_s30, 1  ;;  %p211_p3 = scmp.ne.s32.totalorder %s737_s25, %s733_s24 }
   0x8   : > { %s961_s9 = smov (%p34_p0, %s32_s9), 0  ;;  %p212_p5 = scmp.eq.s32.totalorder %s593_s8, 1 }
   0x9   : > { %p839_p4 = por %p206_p2, %p205_p1  ;;  %s190_s12 = ssub.s32 %s749_s28, %s961_s9 }
   0xa   : > { %p596_p6 = scmp.ge.s32.totalorder %s753_s29, 1  ;;  %p193_p7 = scmp.eq.s32.totalorder %s190_s12, 0 }
   0xb   : > { %p846_p8 = por %p212_p5, %p211_p3  ;;  %p258_p9 = scmp.lt.s32.totalorder %s753_s29, 3 }
   0xc   : > { %s852_s14 = scalar_select %p193_p7, %s741_s26, %s195_s10  }
   0xd   : > { %p259_p10 = pnand %p596_p6, %p258_p9 }
   0xe   : > { %p292_p11 = scmp.lt.s32.totalorder (!%p259_p10), %s745_s27, 1  ;;  %s755_s20 = smov (!%p259_p10), 8  }
   0xf   : > { %262 = sbr.rel (%p259_p10) target bundleno = 653 (0x28d), region = 48  ;;  %s756_s21 = smov (!%p259_p10), 126  }
  0x10   : > { %s757_s22 = smov (!%p259_p10), 124   ;;  %s289_s17 = sand.u32 (!%p259_p10), 1, %s737_s25  }
  0x11   : > { %s597_s18 = sshll.u32 (!%p259_p10), %s289_s17, 3 }
  0x12   : > { %s291_s8 = scalar_lea.vmem (!%p259_p10), [#allocation2], %s597_s18  ;;  %s695_s18 = scalar_lea.hbm (!%p259_p10), %s952_s7, 16 }
  0x13   : > { %s518_s10 = sshll.u32 (!%p259_p10), %s291_s8, 4  ;;  %s519_s10 = int_to_ptr.vmem [resolvable:$true] %s518_s10 }
  0x14   : > { %s293_s15 = scalar_select %p292_p11, %s745_s27, 1  ;;  %vm313_vm0 = vcmask 64512   ;;  %vm327_vm1 = vcmask 1041408   ;;  %v317_v7 = vld [vmem:[%s946_s1] sm:$0xf]  ;;  %vm323_vm2 = vcmask 31744   ;;  %v303_v22 = vlaneseq }
  0x15   : > { %v300_v8 = vld [vmem:[%s947_s2] sm:$0xff]  ;;  %v758_v9 = vmov 0   ;;  %v602_v17 = vld [vmem:[%s946_s1 + $0x8] sm:$0xf]  ;;  %vm408_vm4 = vcmask 1043456   ;;  %vm502_vm5 = vcmask 130048  }
  0x16   : > { %s598_s16 = sshll.u32 %s293_s15, 2  ;;  %673 = vset.pattern.permute.xlu1 %v758_v9  ;;  %674 = vset.pattern.permute.xlu0 %v758_v9  ;;  %v302_v10 = vld [vmem:[%s951_s6] sm:$0xff]  ;;  %v304_v25 = vand.u32 127, %v303_v22  ;;  %v607_v46 = vld [vmem:[%s948_s3 + $0x8] sm:$0xf] }
  0x17   : > { %s298_s19 = scalar_lea.vmem %s945_s0, %s598_s16  ;;  %v599_v16 = vld [vmem:[%s946_s1 + $0x4] sm:$0xf]  ;;  %v475_v18 = vld [vmem:[%s950_s5] sm:$0xf] }
  0x18   : > { %v306_v0 = vld [vmem:[%s298_s19] sm:$0xf]  ;;  %vm305_vm3 = vcmp.ge.s32.totalorder %v304_v25, 4  ;;  %v604_v43 = vld [vmem:[%s948_s3 + $0x4] sm:$0xf]  ;;  %s611_s19 = sshll.u32 %s745_s27, 3 }
  0x19   : > { %v307_v1 = vpack.c.bf16 %v306_v0, %v306_v0  ;;  %v397_v39 = vld [vmem:[%s948_s3] sm:$0xf]  ;;  %s516_s30 = scalar_lea.hbm %s952_s7, %s611_s19  ;;  %s505_s27 = scalar_lea.sflag [#allocation3], %s289_s17 }
  0x1a   : > { %v301_v40 = vld [vmem:[%s949_s4] sm:$0xff]  ;;  %s520_s12 = sshll.u32 %s516_s30, 4  ;;  %s521_s12 = int_to_ptr.hbm [resolvable:$true] %s520_s12 }
  0x1b   : > { %v309_v2 = vunpack.c.l.b16 %v307_v1  ;;  %v485_v13 = vsel %vm327_vm1, %v307_v1, 0 }
  0x1d   : > { %v310_v3 = vpack.c.b16 %v309_v2, %v309_v2 }
  0x1f   : > { %311 = vrot.lane.b32.xlu0 %v310_v3, %s755_s20 }
  0x91   : > { %v312_v4 = vpop.permute.xlu0 %311 }
  0x92   : > { %v316_v5 = vsel %vm313_vm0, 0, %v312_v4 }
  0x93   : > { %321 = vrot.lane.b32.xlu1 %v316_v5, %s756_s21  ;;  %364 = vrot.lane.b32.xlu0 %v316_v5, %s757_s22  ;;  %v347_v6 = vsel %vm327_vm1, %v316_v5, 0 }
  0x94   : > { %356 = vmatpush.bf16.msra.mxu1 %v347_v6 }
  0x97   : > { %601 = vmatmul.msk.bf16.vlgmr.msra.gmra.mxu1 %vm323_vm2, %v317_v7 }
  0x9b   : > { %388 = vperm.xlu1 %673, %v300_v8   ;;  %470 = vperm.xlu0 %674, %v301_v40  }
  0xa3   : > { %478 = vperm.xlu1 %673, %v302_v10  }
 0x105   : > { %v322_v11 = vpop.permute.xlu1 %321  ;;  %v365_v12 = vpop.permute.xlu0 %364 }
 0x106   : > { %v329_v14 = vsel %vm327_vm1, %v322_v11, 0  ;;  %v370_v15 = vsel %vm327_vm1, %v365_v12, 0 }
 0x107   : > { %338 = vmatpush.bf16.msra.mxu0 %v329_v14  ;;  %379 = vmatpush.bf16.msra.mxu2 %v370_v15 }
 0x10a   : > { %600 = vmatmul.msk.bf16.vlgmr.msra.gmra.mxu0 %vm323_vm2, %v599_v16  ;;  %603 = vmatmul.msk.bf16.vlgmr.msra.gmra.mxu2 %vm323_vm2, %v602_v17 }
 0x10b   : > { %494 = vmatpush.bf16.msrb.mxu2 %v485_v13 }
 0x10d   : > { %v389_v27 = vpop.permute.xlu1 %388  ;;  %v471_v52 = vpop.permute.xlu0 %470 }
 0x114   : > { %v358_v19 = vpop.f32.mrf.mxu1 }
 0x115   : > { %v479_v55 = vpop.permute.xlu1 %478 }
 0x11a   : > { %609 = vmatmul.msk.bf16.vlgmr.msrb.gmra.mxu2 %vm323_vm2, %v475_v18 }
 0x11c   : > { %v360_v20 = vpop.f32.mrf.mxu1 }
 0x187   : > { %v340_v21 = vpop.f32.mrf.mxu0 }
 0x188   : > { %v359_v23 = vadd.f32 %v358_v19, %v340_v21 }
 0x18d   : > { %v381_v24 = vpop.f32.mrf.mxu2 }
 0x18e   : > { %v385_v26 = vadd.f32 %v381_v24, %v359_v23 }
 0x18f   : > { %v342_v28 = vpop.f32.mrf.mxu0 }
 0x190   : > { %v391_v29 = vadd.f32 %v389_v27, %v385_v26 }
 0x192   : > { %v392_v30 = vmax.f32 %v391_v29, 0.0 }
 0x194   : > { %v395_v31 = vsel %vm305_vm3, %v392_v30, 0.0 }
 0x195   : > { %v383_v32 = vpop.f32.mrf.mxu2  ;;  %v396_v33 = vpack.c.bf16 %v395_v31, %v395_v31 }
 0x197   : > { %v429_v34 = vsel %vm408_vm4, %v396_v33, 0  ;;  %v401_v35 = vunpack.c.l.b16 %v396_v33 }
 0x198   : > { %438 = vmatpush.bf16.msrb.mxu0 %v429_v34 }
 0x199   : > { %v402_v36 = vpack.c.b16 %v401_v35, %v401_v35 }
 0x19b   : > { %403 = vrot.lane.b32.xlu2 %v402_v36, %s756_s21  ;;  %606 = vmatmul.msk.bf16.vlgmr.msrb.gmra.mxu0 %vm313_vm0, %v397_v39  ;;  %s689_s21 = sshra.s32 %s521_s12, 4  ;;  %s690_s21 = int_to_ptr.hbm [resolvable:$true] %s689_s21 }
 0x19c   : > { %s691_s15 = scalar_lea.hbm %s690_s21, 8  ;;  %p696_p1 = scmp.lt.s32.totalorder %s690_s21, %s952_s7 }
 0x19d   : > { %v496_v37 = vpop.f32.mrf.mxu2  ;;  %p692_p12 = scmp.ne.s32.totalorder %s690_s21, %s691_s15  ;;  %p697_p2 = scmp.lt.s32.totalorder %s695_s18, %s691_s15 }
 0x19e   : > { %v497_v56 = vadd.f32 %v496_v37, %v479_v55 }
 0x19f   : > { %p693_p13 = pnand %p692_p12, %p839_p4  ;;  %p698_p3 = por %p697_p2, %p696_p1 }
 0x1a1   : > { %p694_p0 = pneg %p693_p13 }
 0x1a3   : > { %446 = vrot.lane.b32.xlu2 %v402_v36, %s757_s22  ;;  %p699_p5 = pnand %p698_p3, %p694_p0 }
 0x1a5   : > { %v498_v38 = vpop.f32.mrf.mxu2 }
 0x1f5   : > { %v404_v41 = vpop.permute.xlu2 %403 }
 0x1f6   : > { %v410_v42 = vsel %vm408_vm4, %v404_v41, 0 }
 0x1f7   : > { %419 = vmatpush.bf16.msra.mxu3 %v410_v42 }
 0x1fa   : > { %605 = vmatmul.msk.bf16.vlgmr.msra.gmra.mxu3 %vm313_vm0, %v604_v43 }
 0x1fd   : > { %v447_v44 = vpop.permute.xlu2 %446 }
 0x1fe   : > { %v452_v45 = vsel %vm408_vm4, %v447_v44, 0 }
 0x1ff   : > { %461 = vmatpush.bf16.msrb.mxu1 %v452_v45 }
 0x202   : > { %608 = vmatmul.msk.bf16.vlgmr.msrb.gmra.mxu1 %vm313_vm0, %v607_v46 }
 0x218   : > { %v440_v47 = vpop.f32.mrf.mxu0 }
 0x220   : > { %v442_v48 = vpop.f32.mrf.mxu0 }
 0x27d   : > { %v421_v49 = vpop.f32.mrf.mxu3 }
 0x27e   : > { %v441_v50 = vadd.f32 %v440_v47, %v421_v49 }
 0x27f   : > { %v463_v51 = vpop.f32.mrf.mxu1 }
 0x280   : > { %v467_v53 = vadd.f32 %v463_v51, %v441_v50 }
 0x282   : > { %v473_v54 = vadd.f32 %v471_v52, %v467_v53 }
 0x284   : > { %v474_v57 = vmax.f32 %v473_v54, 0.0 }
 0x285   : > { %v423_v58 = vpop.f32.mrf.mxu3 }
 0x286   : > { %v500_v59 = vadd.f32 %v497_v56, %v474_v57 }
 0x287   : > { %v465_v60 = vpop.f32.mrf.mxu1 }
 0x288   : > { %v501_v61 = vmax.f32 %v500_v59, 0.0 }
 0x28a   : > { %503 = vst.msk [vmem:[%s291_s8] sm:$0xff] %vm502_vm5, %v501_v61 }
 0x28b   : > { %702 = shalt.err (!%p699_p5)
}
 0x28c   : > { %614 = dma.vmem_to_hbm [thread:$0]  (%p839_p4), %s519_s10, 128, %s521_s12, %s505_s27  }
 0x28d PF: > { %p620_p6 = scmp.ge.s32.totalorder %s753_s29, 2  ;;  %s532_s17 = sand.u32 1, %s733_s24  }
 0x28e   : > { %s533_s23 = scalar_lea.sflag [#allocation3], %s532_s17 }
 0x28f   : > { %p617_p7 = pnand %p620_p6, %p846_p8 }
 0x291   : > { %p618_p9 = pneg %p617_p7 }
 0x293   : > { %728 = dma.done.wait (%p618_p9), %s533_s23, 128  }
 0x294   : > { %730 = vsyncadd (%p618_p9), %s533_s23, 4294967168  ;;  %s20_s29 = sadd.s32 1, %s753_s29   ;;  %s955_s24 = smov %s737_s25 }
 0x295   : > { %p17_p10 = scmp.ge.s32.totalorder %s20_s29, 4   ;;  %s956_s25 = smov %s741_s26 }
 0x296   : > { %s957_s26 = smov %s852_s14  ;;  %s958_s27 = smov %s749_s28 }
 0x297   : > { %s959_s28 = smov %s961_s9  ;;  %19 = sbr.rel (!%p17_p10) target bundleno = 4 (0x4), region = 87 }
 0x29c   :  { %539 = vsyncpa [#allocation3], 1 }
 0x29d   :  { %541 = vsyncpa [#allocation3 + $0x1], 1 }

// kernel: tpu_custom_call.1
= control target key start
LH: loop header
LB: loop body
LE: loop exit
PB: predicated region body
PF: predicated region fallthrough
CT: control target
= control target key end

     0   :  { %12 = vsyncpa [#allocation3], 0  ;;  %s945_s0 = inlined_call_operand.vmem [shape: f32[2,4,16], index: 0, kind: input, shape index: {}]   ;;  %s946_s1 = inlined_call_operand.vmem [shape: bf16[3,8,4], index: 1, kind: input, shape index: {}]   ;;  %s947_s2 = inlined_call_operand.vmem [shape: f32[8,1], index: 2, kind: input, shape index: {}]   ;;  %s948_s3 = inlined_call_operand.vmem [shape: bf16[3,8,8], index: 3, kind: input, shape index: {}]   ;;  %s949_s4 = inlined_call_operand.vmem [shape: f32[8,1], index: 4, kind: input, shape index: {}]   ;;  %s950_s5 = inlined_call_operand.vmem [shape: bf16[8,4], index: 5, kind: input, shape index: {}]   ;;  %s951_s6 = inlined_call_operand.vmem [shape: f32[8,1], index: 6, kind: input, shape index: {}]   ;;  %s952_s7 = inlined_call_operand.hbm [shape: f32[2,8,16], index: 7, kind: output, shape index: {}]  }
   0x1   :  { %14 = vsyncpa [#allocation3 + $0x1], 0  ;;  %s799_s24 = smov 0   ;;  %s801_s25 = smov 0  }
   0x2   :  { %s803_s26 = smov 0   ;;  %s805_s27 = smov 0  }
   0x3   :  { %s807_s28 = smov 0   ;;  %s809_s29 = smov 0  }
   0x4 LB: > { %s592_s30 = sadd.s32 4294967295, %s753_s29   ;;  %s593_s8 = sadd.s32 4294967294, %s753_s29   ;;  %s753_s29 = sphi %s809_s29, %s20_s29   ;;  %s749_s28 = sphi %s807_s28, %s959_s28   ;;  %s745_s27 = sphi %s805_s27, %s958_s27   ;;  %s741_s26 = sphi %s803_s26, %s957_s26   ;;  %s737_s25 = sphi %s801_s25, %s956_s25   ;;  %s733_s24 = sphi %s799_s24, %s955_s24  }
   0x5   : > { %s32_s9 = sadd.s32 1, %s749_s28  ;;  %s195_s10 = sadd.s32 1, %s741_s26 }
   0x6   : > { %p34_p0 = scmp.ge.s32.totalorder %s32_s9, 2  ;;  %p205_p1 = scmp.ne.s32.totalorder %s741_s26, %s737_s25 }
   0x7   : > { %p206_p2 = scmp.eq.s32.totalorder %s592_s30, 1  ;;  %p211_p3 = scmp.ne.s32.totalorder %s737_s25, %s733_s24 }
   0x8   : > { %s961_s9 = smov (%p34_p0, %s32_s9), 0  ;;  %p212_p5 = scmp.eq.s32.totalorder %s593_s8, 1 }
   0x9   : > { %p839_p4 = por %p206_p2, %p205_p1  ;;  %s190_s12 = ssub.s32 %s749_s28, %s961_s9 }
   0xa   : > { %p596_p6 = scmp.ge.s32.totalorder %s753_s29, 1  ;;  %p193_p7 = scmp.eq.s32.totalorder %s190_s12, 0 }
   0xb   : > { %p846_p8 = por %p212_p5, %p211_p3  ;;  %p258_p9 = scmp.lt.s32.totalorder %s753_s29, 3 }
   0xc   : > { %s852_s14 = scalar_select %p193_p7, %s741_s26, %s195_s10  }
   0xd   : > { %p259_p10 = pnand %p596_p6, %p258_p9 }
   0xe   : > { %p292_p11 = scmp.lt.s32.totalorder (!%p259_p10), %s745_s27, 1  ;;  %s755_s20 = smov (!%p259_p10), 8  }
   0xf   : > { %262 = sbr.rel (%p259_p10) target bundleno = 653 (0x28d), region = 48  ;;  %s756_s21 = smov (!%p259_p10), 126  }
  0x10   : > { %s757_s22 = smov (!%p259_p10), 124   ;;  %s289_s17 = sand.u32 (!%p259_p10), 1, %s737_s25  }
  0x11   : > { %s597_s18 = sshll.u32 (!%p259_p10), %s289_s17, 3 }
  0x12   : > { %s291_s8 = scalar_lea.vmem (!%p259_p10), [#allocation2], %s597_s18  ;;  %s695_s18 = scalar_lea.hbm (!%p259_p10), %s952_s7, 16 }
  0x13   : > { %s518_s10 = sshll.u32 (!%p259_p10), %s291_s8, 4  ;;  %s519_s10 = int_to_ptr.vmem [resolvable:$true] %s518_s10 }
  0x14   : > { %s293_s15 = scalar_select %p292_p11, %s745_s27, 1  ;;  %vm313_vm0 = vcmask 64512   ;;  %vm327_vm1 = vcmask 1041408   ;;  %v317_v7 = vld [vmem:[%s946_s1] sm:$0xf]  ;;  %vm323_vm2 = vcmask 31744   ;;  %v303_v22 = vlaneseq }
  0x15   : > { %v300_v8 = vld [vmem:[%s947_s2] sm:$0xff]  ;;  %v758_v9 = vmov 0   ;;  %v602_v17 = vld [vmem:[%s946_s1 + $0x8] sm:$0xf]  ;;  %vm408_vm4 = vcmask 1043456   ;;  %vm502_vm5 = vcmask 130048  }
  0x16   : > { %s598_s16 = sshll.u32 %s293_s15, 2  ;;  %673 = vset.pattern.permute.xlu1 %v758_v9  ;;  %674 = vset.pattern.permute.xlu0 %v758_v9  ;;  %v302_v10 = vld [vmem:[%s951_s6] sm:$0xff]  ;;  %v304_v25 = vand.u32 127, %v303_v22  ;;  %v607_v46 = vld [vmem:[%s948_s3 + $0x8] sm:$0xf] }
  0x17   : > { %s298_s19 = scalar_lea.vmem %s945_s0, %s598_s16  ;;  %v599_v16 = vld [vmem:[%s946_s1 + $0x4] sm:$0xf]  ;;  %v475_v18 = vld [vmem:[%s950_s5] sm:$0xf] }
  0x18   : > { %v306_v0 = vld [vmem:[%s298_s19] sm:$0xf]  ;;  %vm305_vm3 = vcmp.ge.s32.totalorder %v304_v25, 4  ;;  %v604_v43 = vld [vmem:[%s948_s3 + $0x4] sm:$0xf]  ;;  %s611_s19 = sshll.u32 %s745_s27, 3 }
  0x19   : > { %v307_v1 = vpack.c.bf16 %v306_v0, %v306_v0  ;;  %v397_v39 = vld [vmem:[%s948_s3] sm:$0xf]  ;;  %s516_s30 = scalar_lea.hbm %s952_s7, %s611_s19  ;;  %s505_s27 = scalar_lea.sflag [#allocation3], %s289_s17 }
  0x1a   : > { %v301_v40 = vld [vmem:[%s949_s4] sm:$0xff]  ;;  %s520_s12 = sshll.u32 %s516_s30, 4  ;;  %s521_s12 = int_to_ptr.hbm [resolvable:$true] %s520_s12 }
  0x1b   : > { %v309_v2 = vunpack.c.l.b16 %v307_v1  ;;  %v485_v13 = vsel %vm327_vm1, %v307_v1, 0 }
  0x1d   : > { %v310_v3 = vpack.c.b16 %v309_v2, %v309_v2 }
  0x1f   : > { %311 = vrot.lane.b32.xlu0 %v310_v3, %s755_s20 }
  0x91   : > { %v312_v4 = vpop.permute.xlu0 %311 }
  0x92   : > { %v316_v5 = vsel %vm313_vm0, 0, %v312_v4 }
  0x93   : > { %321 = vrot.lane.b32.xlu1 %v316_v5, %s756_s21  ;;  %364 = vrot.lane.b32.xlu0 %v316_v5, %s757_s22  ;;  %v347_v6 = vsel %vm327_vm1, %v316_v5, 0 }
  0x94   : > { %356 = vmatpush.bf16.msra.mxu1 %v347_v6 }
  0x97   : > { %601 = vmatmul.msk.bf16.vlgmr.msra.gmra.mxu1 %vm323_vm2, %v317_v7 }
  0x9b   : > { %388 = vperm.xlu1 %673, %v300_v8   ;;  %470 = vperm.xlu0 %674, %v301_v40  }
  0xa3   : > { %478 = vperm.xlu1 %673, %v302_v10  }
 0x105   : > { %v322_v11 = vpop.permute.xlu1 %321  ;;  %v365_v12 = vpop.permute.xlu0 %364 }
 0x106   : > { %v329_v14 = vsel %vm327_vm1, %v322_v11, 0  ;;  %v370_v15 = vsel %vm327_vm1, %v365_v12, 0 }
 0x107   : > { %338 = vmatpush.bf16.msra.mxu0 %v329_v14  ;;  %379 = vmatpush.bf16.msra.mxu2 %v370_v15 }
 0x10a   : > { %600 = vmatmul.msk.bf16.vlgmr.msra.gmra.mxu0 %vm323_vm2, %v599_v16  ;;  %603 = vmatmul.msk.bf16.vlgmr.msra.gmra.mxu2 %vm323_vm2, %v602_v17 }
 0x10b   : > { %494 = vmatpush.bf16.msrb.mxu2 %v485_v13 }
 0x10d   : > { %v389_v27 = vpop.permute.xlu1 %388  ;;  %v471_v52 = vpop.permute.xlu0 %470 }
 0x114   : > { %v358_v19 = vpop.f32.mrf.mxu1 }
 0x115   : > { %v479_v55 = vpop.permute.xlu1 %478 }
 0x11a   : > { %609 = vmatmul.msk.bf16.vlgmr.msrb.gmra.mxu2 %vm323_vm2, %v475_v18 }
 0x11c   : > { %v360_v20 = vpop.f32.mrf.mxu1 }
 0x187   : > { %v340_v21 = vpop.f32.mrf.mxu0 }
 0x188   : > { %v359_v23 = vadd.f32 %v358_v19, %v340_v21 }
 0x18d   : > { %v381_v24 = vpop.f32.mrf.mxu2 }
 0x18e   : > { %v385_v26 = vadd.f32 %v381_v24, %v359_v23 }
 0x18f   : > { %v342_v28 = vpop.f32.mrf.mxu0 }
 0x190   : > { %v391_v29 = vadd.f32 %v389_v27, %v385_v26 }
 0x192   : > { %v392_v30 = vmax.f32 %v391_v29, 0.0 }
 0x194   : > { %v395_v31 = vsel %vm305_vm3, %v392_v30, 0.0 }
 0x195   : > { %v383_v32 = vpop.f32.mrf.mxu2  ;;  %v396_v33 = vpack.c.bf16 %v395_v31, %v395_v31 }
 0x197   : > { %v429_v34 = vsel %vm408_vm4, %v396_v33, 0  ;;  %v401_v35 = vunpack.c.l.b16 %v396_v33 }
 0x198   : > { %438 = vmatpush.bf16.msrb.mxu0 %v429_v34 }
 0x199   : > { %v402_v36 = vpack.c.b16 %v401_v35, %v401_v35 }
 0x19b   : > { %403 = vrot.lane.b32.xlu2 %v402_v36, %s756_s21  ;;  %606 = vmatmul.msk.bf16.vlgmr.msrb.gmra.mxu0 %vm313_vm0, %v397_v39  ;;  %s689_s21 = sshra.s32 %s521_s12, 4  ;;  %s690_s21 = int_to_ptr.hbm [resolvable:$true] %s689_s21 }
 0x19c   : > { %s691_s15 = scalar_lea.hbm %s690_s21, 8  ;;  %p696_p1 = scmp.lt.s32.totalorder %s690_s21, %s952_s7 }
 0x19d   : > { %v496_v37 = vpop.f32.mrf.mxu2  ;;  %p692_p12 = scmp.ne.s32.totalorder %s690_s21, %s691_s15  ;;  %p697_p2 = scmp.lt.s32.totalorder %s695_s18, %s691_s15 }
 0x19e   : > { %v497_v56 = vadd.f32 %v496_v37, %v479_v55 }
 0x19f   : > { %p693_p13 = pnand %p692_p12, %p839_p4  ;;  %p698_p3 = por %p697_p2, %p696_p1 }
 0x1a1   : > { %p694_p0 = pneg %p693_p13 }
 0x1a3   : > { %446 = vrot.lane.b32.xlu2 %v402_v36, %s757_s22  ;;  %p699_p5 = pnand %p698_p3, %p694_p0 }
 0x1a5   : > { %v498_v38 = vpop.f32.mrf.mxu2 }
 0x1f5   : > { %v404_v41 = vpop.permute.xlu2 %403 }
 0x1f6   : > { %v410_v42 = vsel %vm408_vm4, %v404_v41, 0 }
 0x1f7   : > { %419 = vmatpush.bf16.msra.mxu3 %v410_v42 }
 0x1fa   : > { %605 = vmatmul.msk.bf16.vlgmr.msra.gmra.mxu3 %vm313_vm0, %v604_v43 }
 0x1fd   : > { %v447_v44 = vpop.permute.xlu2 %446 }
 0x1fe   : > { %v452_v45 = vsel %vm408_vm4, %v447_v44, 0 }
 0x1ff   : > { %461 = vmatpush.bf16.msrb.mxu1 %v452_v45 }
 0x202   : > { %608 = vmatmul.msk.bf16.vlgmr.msrb.gmra.mxu1 %vm313_vm0, %v607_v46 }
 0x218   : > { %v440_v47 = vpop.f32.mrf.mxu0 }
 0x220   : > { %v442_v48 = vpop.f32.mrf.mxu0 }
 0x27d   : > { %v421_v49 = vpop.f32.mrf.mxu3 }
 0x27e   : > { %v441_v50 = vadd.f32 %v440_v47, %v421_v49 }
 0x27f   : > { %v463_v51 = vpop.f32.mrf.mxu1 }
 0x280   : > { %v467_v53 = vadd.f32 %v463_v51, %v441_v50 }
 0x282   : > { %v473_v54 = vadd.f32 %v471_v52, %v467_v53 }
 0x284   : > { %v474_v57 = vmax.f32 %v473_v54, 0.0 }
 0x285   : > { %v423_v58 = vpop.f32.mrf.mxu3 }
 0x286   : > { %v500_v59 = vadd.f32 %v497_v56, %v474_v57 }
 0x287   : > { %v465_v60 = vpop.f32.mrf.mxu1 }
 0x288   : > { %v501_v61 = vmax.f32 %v500_v59, 0.0 }
 0x28a   : > { %503 = vst.msk [vmem:[%s291_s8] sm:$0xff] %vm502_vm5, %v501_v61 }
 0x28b   : > { %702 = shalt.err (!%p699_p5)
}
 0x28c   : > { %614 = dma.vmem_to_hbm [thread:$0]  (%p839_p4), %s519_s10, 128, %s521_s12, %s505_s27  }
 0x28d PF: > { %p620_p6 = scmp.ge.s32.totalorder %s753_s29, 2  ;;  %s532_s17 = sand.u32 1, %s733_s24  }
 0x28e   : > { %s533_s23 = scalar_lea.sflag [#allocation3], %s532_s17 }
 0x28f   : > { %p617_p7 = pnand %p620_p6, %p846_p8 }
 0x291   : > { %p618_p9 = pneg %p617_p7 }
 0x293   : > { %728 = dma.done.wait (%p618_p9), %s533_s23, 128  }
 0x294   : > { %730 = vsyncadd (%p618_p9), %s533_s23, 4294967168  ;;  %s20_s29 = sadd.s32 1, %s753_s29   ;;  %s955_s24 = smov %s737_s25 }
 0x295   : > { %p17_p10 = scmp.ge.s32.totalorder %s20_s29, 4   ;;  %s956_s25 = smov %s741_s26 }
 0x296   : > { %s957_s26 = smov %s852_s14  ;;  %s958_s27 = smov %s749_s28 }
 0x297   : > { %s959_s28 = smov %s961_s9  ;;  %19 = sbr.rel (!%p17_p10) target bundleno = 4 (0x4), region = 87 }
 0x29c   :  { %539 = vsyncpa [#allocation3], 1 }
 0x29d   :  { %541 = vsyncpa [#allocation3 + $0x1], 1 }

</bundles_post_ra>
